<compile_context>
chip_gen: v7x
topology: tpu7x:2x2x1
jax: 0.10.0
libtpu: 0.0.40
codegen_flags: <defaults>
</compile_context>

<pallas_src>
import functools
import math

import jax
import jax.numpy as jnp
from jax.experimental import pallas as pl
from jax.experimental.pallas import tpu as pltpu


def _mha_kernel(x_ref, wq_ref, wk_ref, wv_ref, wo_ref,
                bq_ref, bk_ref, bv_ref, bo_ref, o_ref,
                *, num_heads, head_dim):
    # x_ref : (1, S, E) bf16      w*_ref : (E, E) bf16 (already transposed)
    # b*_ref: (1, E)    f32       o_ref  : (1, S, E) f32
    f32, bf16 = jnp.float32, jnp.bfloat16
    x = x_ref[0]                                                 # (S, E) bf16

    # Projections: bf16 operands on the MXU, f32 accumulation, f32 bias add.
    # NB: k and v are computed from the already-projected q (PyTorch module).
    q = jnp.dot(x, wq_ref[...], preferred_element_type=f32) + bq_ref[...]
    q16 = q.astype(bf16)
    k = jnp.dot(q16, wk_ref[...], preferred_element_type=f32) + bk_ref[...]
    v = jnp.dot(q16, wv_ref[...], preferred_element_type=f32) + bv_ref[...]

    # Fold the attention scale into q once (cheaper than scaling each SxS
    # score matrix); cast the matmul operands to bf16 once for all heads.
    scale = 1.0 / math.sqrt(head_dim)
    q_s = (q * scale).astype(bf16)                               # (S, E)
    k16 = k.astype(bf16)                                         # (S, E)
    v16 = v.astype(bf16)                                         # (S, E)

    S, E = q.shape
    out_acc = jnp.zeros((S, E), dtype=f32)

    # Static unroll over heads (num_heads is a Python int).
    for h in range(num_heads):
        lo = h * head_dim
        qh = q_s[:, lo:lo + head_dim]                            # (S, Dh) bf16
        kh = k16[:, lo:lo + head_dim]                            # (S, Dh) bf16
        vh = v16[:, lo:lo + head_dim]                            # (S, Dh) bf16

        # scores = (qh / sqrt(Dh)) @ kh^T  -> (S, S), accumulated in f32
        scores = jax.lax.dot_general(
            qh, kh, (((1,), (1,)), ((), ())),
            preferred_element_type=f32)

        # numerically-stable softmax over keys (f32)
        m = jnp.max(scores, axis=-1, keepdims=True)
        p = jnp.exp(scores - m)
        denom = jnp.sum(p, axis=-1, keepdims=True)
        attn = p * pl.reciprocal(denom, approx=True)

        ctx_h = jnp.dot(attn.astype(bf16), vh,
                        preferred_element_type=f32)              # (S, Dh) f32

        # Output projection decomposed per head:
        #   concat_h(ctx_h) @ Wo == sum_h ctx_h @ Wo[lo:lo+Dh, :]
        wo_rows = wo_ref[lo:lo + head_dim, :]                    # (Dh, E) bf16
        out_acc = out_acc + jnp.dot(ctx_h.astype(bf16), wo_rows,
                                    preferred_element_type=f32)

    o_ref[0] = (out_acc + bo_ref[...]).astype(o_ref.dtype)


def multi_head_attention_forward(x, wq, bq, wk, bk, wv, bv, wo, bo, num_heads):
    """x: (B, S, E) f32; W*: (E, E) PyTorch (out, in) layout; b*: (E,)."""
    B, S, E = x.shape
    assert E % num_heads == 0, "embed_size must be divisible by num_heads"
    head_dim = E // num_heads

    # PyTorch Linear weights are (out, in); transpose once so the kernel does
    # plain x @ W.  Cast matmul operands to bf16 in the wrapper (halves their
    # DMA bytes); biases and the output stay f32.
    to_mat = lambda w: w.T.astype(jnp.bfloat16)                  # (in, out)
    wq_m, wk_m, wv_m, wo_m = to_mat(wq), to_mat(wk), to_mat(wv), to_mat(wo)
    bq_r, bk_r, bv_r, bo_r = (b.reshape(1, E).astype(jnp.float32)
                              for b in (bq, bk, bv, bo))
    x16 = x.astype(jnp.bfloat16)

    kernel = functools.partial(_mha_kernel,
                               num_heads=num_heads, head_dim=head_dim)

    w_spec = pl.BlockSpec((E, E), lambda b: (0, 0))   # weights: VMEM-resident
    b_spec = pl.BlockSpec((1, E), lambda b: (0, 0))   # biases:  VMEM-resident

    return pl.pallas_call(
        kernel,
        out_shape=jax.ShapeDtypeStruct((B, S, E), jnp.float32),
        grid_spec=pltpu.PrefetchScalarGridSpec(
            num_scalar_prefetch=0,
            grid=(B,),
            in_specs=[
                pl.BlockSpec((1, S, E), lambda b: (b, 0, 0)),    # x of batch b
                w_spec, w_spec, w_spec, w_spec,                  # Wq Wk Wv Wo
                b_spec, b_spec, b_spec, b_spec,                  # bq bk bv bo
            ],
            out_specs=pl.BlockSpec((1, S, E), lambda b: (b, 0, 0)),
        ),
        compiler_params=pltpu.CompilerParams(
            dimension_semantics=("parallel",)),      # shards batch over TCs
    )(x16, wq_m, wk_m, wv_m, wo_m, bq_r, bk_r, bv_r, bo_r)


def _reference_forward(x, wq, bq, wk, bk, wv, bv, wo, bo, num_heads):
    """Pure-JAX f32 reference matching the PyTorch module semantics."""
    B, S, E = x.shape
    Dh = E // num_heads
    q = x @ wq.T + bq
    k = q @ wk.T + bk          # applied to projected q, as in the module
    v = q @ wv.T + bv

    def split(t):
        return jnp.transpose(t.reshape(B, S, num_heads, Dh), (0, 2, 1, 3))

    qh, kh, vh = split(q), split(k), split(v)
    scores = jnp.einsum("bhqd,bhkd->bhqk", qh, kh) / math.sqrt(Dh)
    attn = jax.nn.softmax(scores, axis=-1)
    ctx = jnp.einsum("bhqk,bhkd->bhqd", attn, vh)
    ctx = jnp.transpose(ctx, (0, 2, 1, 3)).reshape(B, S, E)
    return ctx @ wo.T + bo


if __name__ == "__main__":
    # Small shapes consistent with the module: batch=2, seq=8, embed=32,
    # num_heads=4 (embed_size must be divisible by num_heads).
    B, S, E, H = 2, 8, 32, 4

    key = jax.random.PRNGKey(0)
    ks = jax.random.split(key, 9)
    x = jax.random.normal(ks[0], (B, S, E), dtype=jnp.float32)
    init = lambda k, shape: jax.random.normal(k, shape, dtype=jnp.float32) * 0.1
    wq, wk, wv, wo = (init(ks[i], (E, E)) for i in range(1, 5))
    bq, bk, bv, bo = (init(ks[i], (E,)) for i in range(5, 9))

    out = multi_head_attention_forward(x, wq, bq, wk, bk, wv, bv, wo, bo, H)
    out = jax.block_until_ready(out)

    ref = _reference_forward(x, wq, bq, wk, bk, wv, bv, wo, bo, H)
    assert out.shape == (B, S, E), out.shape
    max_err = float(jnp.max(jnp.abs(out - ref)))
    # bf16 matmul operands with f32 accumulation -> bf16-level tolerance.
    assert jnp.allclose(out, ref, atol=2e-2, rtol=2e-2), max_err

    print("KERNEL_OK")
</pallas_src>

<mosaic_0001>
module attributes {stable_mosaic.version = 11 : i64} {
  func.func @_mha_kernel(%arg0: i32, %arg1: memref<1x8x32xbf16, #tpu.memory_space<vmem>>, %arg2: memref<32x32xbf16, #tpu.memory_space<vmem>>, %arg3: memref<32x32xbf16, #tpu.memory_space<vmem>>, %arg4: memref<32x32xbf16, #tpu.memory_space<vmem>>, %arg5: memref<32x32xbf16, #tpu.memory_space<vmem>>, %arg6: memref<1x32xf32, #tpu.memory_space<vmem>>, %arg7: memref<1x32xf32, #tpu.memory_space<vmem>>, %arg8: memref<1x32xf32, #tpu.memory_space<vmem>>, %arg9: memref<1x32xf32, #tpu.memory_space<vmem>>, %arg10: memref<1x8x32xf32, #tpu.memory_space<vmem>>) attributes {dimension_semantics = [#tpu.dimension_semantics<parallel>], iteration_bounds = array<i64: 2>, scalar_prefetch = 0 : i64, scratch_operands = 0 : i64, tpu.core_type = #tpu.core_type<tc>, window_params = [{transform_indices = @transform_0, window_bounds = array<i64: 1, 8, 32>}, {pipeline_mode = #tpu.pipeline_mode<synchronous>, transform_indices = @transform_1, window_bounds = array<i64: 32, 32>}, {pipeline_mode = #tpu.pipeline_mode<synchronous>, transform_indices = @transform_2, window_bounds = array<i64: 32, 32>}, {pipeline_mode = #tpu.pipeline_mode<synchronous>, transform_indices = @transform_3, window_bounds = array<i64: 32, 32>}, {pipeline_mode = #tpu.pipeline_mode<synchronous>, transform_indices = @transform_4, window_bounds = array<i64: 32, 32>}, {pipeline_mode = #tpu.pipeline_mode<synchronous>, transform_indices = @transform_5, window_bounds = array<i64: 1, 32>}, {pipeline_mode = #tpu.pipeline_mode<synchronous>, transform_indices = @transform_6, window_bounds = array<i64: 1, 32>}, {pipeline_mode = #tpu.pipeline_mode<synchronous>, transform_indices = @transform_7, window_bounds = array<i64: 1, 32>}, {pipeline_mode = #tpu.pipeline_mode<synchronous>, transform_indices = @transform_8, window_bounds = array<i64: 1, 32>}, {transform_indices = @transform_9, window_bounds = array<i64: 1, 8, 32>}]} {
    %c0 = arith.constant 0 : index
    %c0_0 = arith.constant 0 : index
    %c0_1 = arith.constant 0 : index
    %0 = vector.load %arg1[%c0, %c0_0, %c0_1] : memref<1x8x32xbf16, #tpu.memory_space<vmem>>, vector<1x8x32xbf16>
    %1 = vector.shape_cast %0 : vector<1x8x32xbf16> to vector<8x32xbf16>
    %c0_2 = arith.constant 0 : index
    %c0_3 = arith.constant 0 : index
    %2 = vector.load %arg2[%c0_2, %c0_3] : memref<32x32xbf16, #tpu.memory_space<vmem>>, vector<32x32xbf16>
    %cst = arith.constant dense<0.000000e+00> : vector<8x32xf32>
    %3 = tpu.matmul %1, %2, %cst {dimension_numbers = #tpu.dot_dimension_numbers<[1], [0], [0], [1], [0, 0, 1, 1], [], []>} : vector<8x32xbf16>, vector<32x32xbf16>, vector<8x32xf32> -> vector<8x32xf32>
    %c0_4 = arith.constant 0 : index
    %c0_5 = arith.constant 0 : index
    %4 = vector.load %arg6[%c0_4, %c0_5] : memref<1x32xf32, #tpu.memory_space<vmem>>, vector<1x32xf32>
    %5 = vector.broadcast %4 : vector<1x32xf32> to vector<8x32xf32>
    %6 = arith.addf %3, %5 : vector<8x32xf32>
    %7 = arith.truncf %6 : vector<8x32xf32> to vector<8x32xbf16>
    %c0_6 = arith.constant 0 : index
    %c0_7 = arith.constant 0 : index
    %8 = vector.load %arg3[%c0_6, %c0_7] : memref<32x32xbf16, #tpu.memory_space<vmem>>, vector<32x32xbf16>
    %cst_8 = arith.constant dense<0.000000e+00> : vector<8x32xf32>
    %9 = tpu.matmul %7, %8, %cst_8 {dimension_numbers = #tpu.dot_dimension_numbers<[1], [0], [0], [1], [0, 0, 1, 1], [], []>} : vector<8x32xbf16>, vector<32x32xbf16>, vector<8x32xf32> -> vector<8x32xf32>
    %c0_9 = arith.constant 0 : index
    %c0_10 = arith.constant 0 : index
    %10 = vector.load %arg7[%c0_9, %c0_10] : memref<1x32xf32, #tpu.memory_space<vmem>>, vector<1x32xf32>
    %11 = vector.broadcast %10 : vector<1x32xf32> to vector<8x32xf32>
    %12 = arith.addf %9, %11 : vector<8x32xf32>
    %c0_11 = arith.constant 0 : index
    %c0_12 = arith.constant 0 : index
    %13 = vector.load %arg4[%c0_11, %c0_12] : memref<32x32xbf16, #tpu.memory_space<vmem>>, vector<32x32xbf16>
    %cst_13 = arith.constant dense<0.000000e+00> : vector<8x32xf32>
    %14 = tpu.matmul %7, %13, %cst_13 {dimension_numbers = #tpu.dot_dimension_numbers<[1], [0], [0], [1], [0, 0, 1, 1], [], []>} : vector<8x32xbf16>, vector<32x32xbf16>, vector<8x32xf32> -> vector<8x32xf32>
    %c0_14 = arith.constant 0 : index
    %c0_15 = arith.constant 0 : index
    %15 = vector.load %arg8[%c0_14, %c0_15] : memref<1x32xf32, #tpu.memory_space<vmem>>, vector<1x32xf32>
    %16 = vector.broadcast %15 : vector<1x32xf32> to vector<8x32xf32>
    %17 = arith.addf %14, %16 : vector<8x32xf32>
    %cst_16 = arith.constant 0.353553385 : f32
    %18 = vector.broadcast %cst_16 : f32 to vector<8x32xf32>
    %19 = arith.mulf %6, %18 : vector<8x32xf32>
    %20 = arith.truncf %19 : vector<8x32xf32> to vector<8x32xbf16>
    %21 = arith.truncf %12 : vector<8x32xf32> to vector<8x32xbf16>
    %22 = arith.truncf %17 : vector<8x32xf32> to vector<8x32xbf16>
    %cst_17 = arith.constant 0.000000e+00 : f32
    %23 = vector.broadcast %cst_17 : f32 to vector<8x32xf32>
    %24 = vector.extract_strided_slice %20 {offsets = [0, 0], sizes = [8, 8], strides = [1, 1]} : vector<8x32xbf16> to vector<8x8xbf16>
    %25 = vector.extract_strided_slice %21 {offsets = [0, 0], sizes = [8, 8], strides = [1, 1]} : vector<8x32xbf16> to vector<8x8xbf16>
    %26 = vector.extract_strided_slice %22 {offsets = [0, 0], sizes = [8, 8], strides = [1, 1]} : vector<8x32xbf16> to vector<8x8xbf16>
    %cst_18 = arith.constant dense<0.000000e+00> : vector<8x8xf32>
    %27 = tpu.matmul %24, %25, %cst_18 {dimension_numbers = #tpu.dot_dimension_numbers<[1], [1], [0], [0], [0, 0, 1, 0], [], []>} : vector<8x8xbf16>, vector<8x8xbf16>, vector<8x8xf32> -> vector<8x8xf32>
    %cst_19 = arith.constant dense<0xFF800000> : vector<8xf32>
    %28 = vector.multi_reduction <maximumf>, %27, %cst_19 [1] : vector<8x8xf32> to vector<8xf32>
    %29 = vector.shape_cast %28 : vector<8xf32> to vector<8x1xf32>
    %30 = vector.broadcast %29 : vector<8x1xf32> to vector<8x8xf32>
    %31 = arith.subf %27, %30 : vector<8x8xf32>
    %32 = math.exp %31 : vector<8x8xf32>
    %cst_20 = arith.constant dense<0.000000e+00> : vector<8xf32>
    %33 = vector.multi_reduction <add>, %32, %cst_20 [1] : vector<8x8xf32> to vector<8xf32>
    %34 = vector.shape_cast %33 : vector<8xf32> to vector<8x1xf32>
    %35 = tpu.reciprocal %34 {approx = true} : vector<8x1xf32> -> vector<8x1xf32>
    %36 = vector.broadcast %35 : vector<8x1xf32> to vector<8x8xf32>
    %37 = arith.mulf %32, %36 : vector<8x8xf32>
    %38 = arith.truncf %37 : vector<8x8xf32> to vector<8x8xbf16>
    %cst_21 = arith.constant dense<0.000000e+00> : vector<8x8xf32>
    %39 = tpu.matmul %38, %26, %cst_21 {dimension_numbers = #tpu.dot_dimension_numbers<[1], [0], [0], [1], [0, 0, 1, 1], [], []>} : vector<8x8xbf16>, vector<8x8xbf16>, vector<8x8xf32> -> vector<8x8xf32>
    %c0_22 = arith.constant 0 : index
    %c0_23 = arith.constant 0 : index
    %40 = vector.load %arg5[%c0_22, %c0_23] : memref<32x32xbf16, #tpu.memory_space<vmem>>, vector<8x32xbf16>
    %41 = arith.truncf %39 : vector<8x8xf32> to vector<8x8xbf16>
    %cst_24 = arith.constant dense<0.000000e+00> : vector<8x32xf32>
    %42 = tpu.matmul %41, %40, %cst_24 {dimension_numbers = #tpu.dot_dimension_numbers<[1], [0], [0], [1], [0, 0, 1, 1], [], []>} : vector<8x8xbf16>, vector<8x32xbf16>, vector<8x32xf32> -> vector<8x32xf32>
    %43 = arith.addf %23, %42 : vector<8x32xf32>
    %44 = vector.extract_strided_slice %20 {offsets = [0, 8], sizes = [8, 8], strides = [1, 1]} : vector<8x32xbf16> to vector<8x8xbf16>
    %45 = vector.extract_strided_slice %21 {offsets = [0, 8], sizes = [8, 8], strides = [1, 1]} : vector<8x32xbf16> to vector<8x8xbf16>
    %46 = vector.extract_strided_slice %22 {offsets = [0, 8], sizes = [8, 8], strides = [1, 1]} : vector<8x32xbf16> to vector<8x8xbf16>
    %cst_25 = arith.constant dense<0.000000e+00> : vector<8x8xf32>
    %47 = tpu.matmul %44, %45, %cst_25 {dimension_numbers = #tpu.dot_dimension_numbers<[1], [1], [0], [0], [0, 0, 1, 0], [], []>} : vector<8x8xbf16>, vector<8x8xbf16>, vector<8x8xf32> -> vector<8x8xf32>
    %cst_26 = arith.constant dense<0xFF800000> : vector<8xf32>
    %48 = vector.multi_reduction <maximumf>, %47, %cst_26 [1] : vector<8x8xf32> to vector<8xf32>
    %49 = vector.shape_cast %48 : vector<8xf32> to vector<8x1xf32>
    %50 = vector.broadcast %49 : vector<8x1xf32> to vector<8x8xf32>
    %51 = arith.subf %47, %50 : vector<8x8xf32>
    %52 = math.exp %51 : vector<8x8xf32>
    %cst_27 = arith.constant dense<0.000000e+00> : vector<8xf32>
    %53 = vector.multi_reduction <add>, %52, %cst_27 [1] : vector<8x8xf32> to vector<8xf32>
    %54 = vector.shape_cast %53 : vector<8xf32> to vector<8x1xf32>
    %55 = tpu.reciprocal %54 {approx = true} : vector<8x1xf32> -> vector<8x1xf32>
    %56 = vector.broadcast %55 : vector<8x1xf32> to vector<8x8xf32>
    %57 = arith.mulf %52, %56 : vector<8x8xf32>
    %58 = arith.truncf %57 : vector<8x8xf32> to vector<8x8xbf16>
    %cst_28 = arith.constant dense<0.000000e+00> : vector<8x8xf32>
    %59 = tpu.matmul %58, %46, %cst_28 {dimension_numbers = #tpu.dot_dimension_numbers<[1], [0], [0], [1], [0, 0, 1, 1], [], []>} : vector<8x8xbf16>, vector<8x8xbf16>, vector<8x8xf32> -> vector<8x8xf32>
    %c8 = arith.constant 8 : index
    %c0_29 = arith.constant 0 : index
    %60 = vector.load %arg5[%c8, %c0_29] : memref<32x32xbf16, #tpu.memory_space<vmem>>, vector<8x32xbf16>
    %61 = arith.truncf %59 : vector<8x8xf32> to vector<8x8xbf16>
    %cst_30 = arith.constant dense<0.000000e+00> : vector<8x32xf32>
    %62 = tpu.matmul %61, %60, %cst_30 {dimension_numbers = #tpu.dot_dimension_numbers<[1], [0], [0], [1], [0, 0, 1, 1], [], []>} : vector<8x8xbf16>, vector<8x32xbf16>, vector<8x32xf32> -> vector<8x32xf32>
    %63 = arith.addf %43, %62 : vector<8x32xf32>
    %64 = vector.extract_strided_slice %20 {offsets = [0, 16], sizes = [8, 8], strides = [1, 1]} : vector<8x32xbf16> to vector<8x8xbf16>
    %65 = vector.extract_strided_slice %21 {offsets = [0, 16], sizes = [8, 8], strides = [1, 1]} : vector<8x32xbf16> to vector<8x8xbf16>
    %66 = vector.extract_strided_slice %22 {offsets = [0, 16], sizes = [8, 8], strides = [1, 1]} : vector<8x32xbf16> to vector<8x8xbf16>
    %cst_31 = arith.constant dense<0.000000e+00> : vector<8x8xf32>
    %67 = tpu.matmul %64, %65, %cst_31 {dimension_numbers = #tpu.dot_dimension_numbers<[1], [1], [0], [0], [0, 0, 1, 0], [], []>} : vector<8x8xbf16>, vector<8x8xbf16>, vector<8x8xf32> -> vector<8x8xf32>
    %cst_32 = arith.constant dense<0xFF800000> : vector<8xf32>
    %68 = vector.multi_reduction <maximumf>, %67, %cst_32 [1] : vector<8x8xf32> to vector<8xf32>
    %69 = vector.shape_cast %68 : vector<8xf32> to vector<8x1xf32>
    %70 = vector.broadcast %69 : vector<8x1xf32> to vector<8x8xf32>
    %71 = arith.subf %67, %70 : vector<8x8xf32>
    %72 = math.exp %71 : vector<8x8xf32>
    %cst_33 = arith.constant dense<0.000000e+00> : vector<8xf32>
    %73 = vector.multi_reduction <add>, %72, %cst_33 [1] : vector<8x8xf32> to vector<8xf32>
    %74 = vector.shape_cast %73 : vector<8xf32> to vector<8x1xf32>
    %75 = tpu.reciprocal %74 {approx = true} : vector<8x1xf32> -> vector<8x1xf32>
    %76 = vector.broadcast %75 : vector<8x1xf32> to vector<8x8xf32>
    %77 = arith.mulf %72, %76 : vector<8x8xf32>
    %78 = arith.truncf %77 : vector<8x8xf32> to vector<8x8xbf16>
    %cst_34 = arith.constant dense<0.000000e+00> : vector<8x8xf32>
    %79 = tpu.matmul %78, %66, %cst_34 {dimension_numbers = #tpu.dot_dimension_numbers<[1], [0], [0], [1], [0, 0, 1, 1], [], []>} : vector<8x8xbf16>, vector<8x8xbf16>, vector<8x8xf32> -> vector<8x8xf32>
    %c16 = arith.constant 16 : index
    %c0_35 = arith.constant 0 : index
    %80 = vector.load %arg5[%c16, %c0_35] : memref<32x32xbf16, #tpu.memory_space<vmem>>, vector<8x32xbf16>
    %81 = arith.truncf %79 : vector<8x8xf32> to vector<8x8xbf16>
    %cst_36 = arith.constant dense<0.000000e+00> : vector<8x32xf32>
    %82 = tpu.matmul %81, %80, %cst_36 {dimension_numbers = #tpu.dot_dimension_numbers<[1], [0], [0], [1], [0, 0, 1, 1], [], []>} : vector<8x8xbf16>, vector<8x32xbf16>, vector<8x32xf32> -> vector<8x32xf32>
    %83 = arith.addf %63, %82 : vector<8x32xf32>
    %84 = vector.extract_strided_slice %20 {offsets = [0, 24], sizes = [8, 8], strides = [1, 1]} : vector<8x32xbf16> to vector<8x8xbf16>
    %85 = vector.extract_strided_slice %21 {offsets = [0, 24], sizes = [8, 8], strides = [1, 1]} : vector<8x32xbf16> to vector<8x8xbf16>
    %86 = vector.extract_strided_slice %22 {offsets = [0, 24], sizes = [8, 8], strides = [1, 1]} : vector<8x32xbf16> to vector<8x8xbf16>
    %cst_37 = arith.constant dense<0.000000e+00> : vector<8x8xf32>
    %87 = tpu.matmul %84, %85, %cst_37 {dimension_numbers = #tpu.dot_dimension_numbers<[1], [1], [0], [0], [0, 0, 1, 0], [], []>} : vector<8x8xbf16>, vector<8x8xbf16>, vector<8x8xf32> -> vector<8x8xf32>
    %cst_38 = arith.constant dense<0xFF800000> : vector<8xf32>
    %88 = vector.multi_reduction <maximumf>, %87, %cst_38 [1] : vector<8x8xf32> to vector<8xf32>
    %89 = vector.shape_cast %88 : vector<8xf32> to vector<8x1xf32>
    %90 = vector.broadcast %89 : vector<8x1xf32> to vector<8x8xf32>
    %91 = arith.subf %87, %90 : vector<8x8xf32>
    %92 = math.exp %91 : vector<8x8xf32>
    %cst_39 = arith.constant dense<0.000000e+00> : vector<8xf32>
    %93 = vector.multi_reduction <add>, %92, %cst_39 [1] : vector<8x8xf32> to vector<8xf32>
    %94 = vector.shape_cast %93 : vector<8xf32> to vector<8x1xf32>
    %95 = tpu.reciprocal %94 {approx = true} : vector<8x1xf32> -> vector<8x1xf32>
    %96 = vector.broadcast %95 : vector<8x1xf32> to vector<8x8xf32>
    %97 = arith.mulf %92, %96 : vector<8x8xf32>
    %98 = arith.truncf %97 : vector<8x8xf32> to vector<8x8xbf16>
    %cst_40 = arith.constant dense<0.000000e+00> : vector<8x8xf32>
    %99 = tpu.matmul %98, %86, %cst_40 {dimension_numbers = #tpu.dot_dimension_numbers<[1], [0], [0], [1], [0, 0, 1, 1], [], []>} : vector<8x8xbf16>, vector<8x8xbf16>, vector<8x8xf32> -> vector<8x8xf32>
    %c24 = arith.constant 24 : index
    %c0_41 = arith.constant 0 : index
    %100 = vector.load %arg5[%c24, %c0_41] : memref<32x32xbf16, #tpu.memory_space<vmem>>, vector<8x32xbf16>
    %101 = arith.truncf %99 : vector<8x8xf32> to vector<8x8xbf16>
    %cst_42 = arith.constant dense<0.000000e+00> : vector<8x32xf32>
    %102 = tpu.matmul %101, %100, %cst_42 {dimension_numbers = #tpu.dot_dimension_numbers<[1], [0], [0], [1], [0, 0, 1, 1], [], []>} : vector<8x8xbf16>, vector<8x32xbf16>, vector<8x32xf32> -> vector<8x32xf32>
    %103 = arith.addf %83, %102 : vector<8x32xf32>
    %c0_43 = arith.constant 0 : index
    %c0_44 = arith.constant 0 : index
    %104 = vector.load %arg9[%c0_43, %c0_44] : memref<1x32xf32, #tpu.memory_space<vmem>>, vector<1x32xf32>
    %105 = vector.broadcast %104 : vector<1x32xf32> to vector<8x32xf32>
    %106 = arith.addf %103, %105 : vector<8x32xf32>
    %c0_45 = arith.constant 0 : index
    %c0_46 = arith.constant 0 : index
    %c0_47 = arith.constant 0 : index
    %107 = vector.load %arg10[%c0_45, %c0_46, %c0_47] : memref<1x8x32xf32, #tpu.memory_space<vmem>>, vector<1x8x32xf32>
    %108 = vector.shape_cast %107 : vector<1x8x32xf32> to vector<8x32xf32>
    %109 = vector.shape_cast %106 : vector<8x32xf32> to vector<1x8x32xf32>
    tpu.vector_store %arg10[%c0_45, %c0_46, %c0_47], %109 {strides = array<i32>} : memref<1x8x32xf32, #tpu.memory_space<vmem>>, vector<1x8x32xf32>,
    return
  }
  func.func @transform_0(%arg0: i32) -> (i32, i32, i32) {
    %c0_i32 = arith.constant 0 : i32
    %c0_i32_0 = arith.constant 0 : i32
    %c0_i32_1 = arith.constant 0 : i32
    return %arg0, %c0_i32, %c0_i32_0 : i32, i32, i32
  }
  func.func @transform_1(%arg0: i32) -> (i32, i32) {
    %c0_i32 = arith.constant 0 : i32
    %c0_i32_0 = arith.constant 0 : i32
    %c0_i32_1 = arith.constant 0 : i32
    return %c0_i32, %c0_i32_0 : i32, i32
  }
  func.func @transform_2(%arg0: i32) -> (i32, i32) {
    %c0_i32 = arith.constant 0 : i32
    %c0_i32_0 = arith.constant 0 : i32
    %c0_i32_1 = arith.constant 0 : i32
    return %c0_i32, %c0_i32_0 : i32, i32
  }
  func.func @transform_3(%arg0: i32) -> (i32, i32) {
    %c0_i32 = arith.constant 0 : i32
    %c0_i32_0 = arith.constant 0 : i32
    %c0_i32_1 = arith.constant 0 : i32
    return %c0_i32, %c0_i32_0 : i32, i32
  }
  func.func @transform_4(%arg0: i32) -> (i32, i32) {
    %c0_i32 = arith.constant 0 : i32
    %c0_i32_0 = arith.constant 0 : i32
    %c0_i32_1 = arith.constant 0 : i32
    return %c0_i32, %c0_i32_0 : i32, i32
  }
  func.func @transform_5(%arg0: i32) -> (i32, i32) {
    %c0_i32 = arith.constant 0 : i32
    %c0_i32_0 = arith.constant 0 : i32
    %c0_i32_1 = arith.constant 0 : i32
    return %c0_i32, %c0_i32_0 : i32, i32
  }
  func.func @transform_6(%arg0: i32) -> (i32, i32) {
    %c0_i32 = arith.constant 0 : i32
    %c0_i32_0 = arith.constant 0 : i32
    %c0_i32_1 = arith.constant 0 : i32
    return %c0_i32, %c0_i32_0 : i32, i32
  }
  func.func @transform_7(%arg0: i32) -> (i32, i32) {
    %c0_i32 = arith.constant 0 : i32
    %c0_i32_0 = arith.constant 0 : i32
    %c0_i32_1 = arith.constant 0 : i32
    return %c0_i32, %c0_i32_0 : i32, i32
  }
  func.func @transform_8(%arg0: i32) -> (i32, i32) {
    %c0_i32 = arith.constant 0 : i32
    %c0_i32_0 = arith.constant 0 : i32
    %c0_i32_1 = arith.constant 0 : i32
    return %c0_i32, %c0_i32_0 : i32, i32
  }
  func.func @transform_9(%arg0: i32) -> (i32, i32, i32) {
    %c0_i32 = arith.constant 0 : i32
    %c0_i32_0 = arith.constant 0 : i32
    %c0_i32_1 = arith.constant 0 : i32
    return %arg0, %c0_i32, %c0_i32_0 : i32, i32, i32
  }
}

</mosaic_0001>

<bundles_post_ra>
// kernel: tpu_custom_call.1
= control target key start
LH: loop header
LB: loop body
LE: loop exit
PB: predicated region body
PF: predicated region fallthrough
CT: control target
= control target key end

     0   :  { %s2360_s0 = inlined_call_operand.hbm [shape: bf16[2,8,32], index: 0, kind: input, shape index: {}]   ;;  %s2361_s1 = inlined_call_operand.hbm [shape: bf16[32,32], index: 1, kind: input, shape index: {}]   ;;  %s2362_s2 = inlined_call_operand.hbm [shape: bf16[32,32], index: 2, kind: input, shape index: {}]   ;;  %s2363_s3 = inlined_call_operand.hbm [shape: bf16[32,32], index: 3, kind: input, shape index: {}]   ;;  %s2364_s4 = inlined_call_operand.hbm [shape: bf16[32,32], index: 4, kind: input, shape index: {}]   ;;  %s2365_s5 = inlined_call_operand.vmem [shape: f32[1,32], index: 5, kind: input, shape index: {}]   ;;  %s2366_s6 = inlined_call_operand.vmem [shape: f32[1,32], index: 6, kind: input, shape index: {}]   ;;  %s2367_s7 = inlined_call_operand.vmem [shape: f32[1,32], index: 7, kind: input, shape index: {}]   ;;  %s2368_s8 = inlined_call_operand.vmem [shape: f32[1,32], index: 8, kind: input, shape index: {}]   ;;  %s2369_s9 = inlined_call_operand.hbm [shape: f32[2,8,32], index: 9, kind: output, shape index: {}]  }
   0x1   :  { %2374 = sst [smem:[#allocation16_spill]] %s2361_s1 }
   0x2   :  { %2375 = sst [smem:[#allocation17_spill]] %s2369_s9 }
   0x3   :  { %14 = vsyncpa [#allocation3], 0 }
   0x4   :  { %16 = vsyncpa [#allocation3 + $0x1], 0 }
   0x5   :  { %17 = vsyncpa [#allocation6], 0 }
   0x6   :  { %18 = vsyncpa [#allocation9], 0 }
   0x7   :  { %19 = vsyncpa [#allocation4], 0 }
   0x8   :  { %21 = vsyncpa [#allocation4 + $0x1], 0  ;;  %s1944_s30 = smov 0   ;;  %s1946_s10 = smov 0  }
   0x9   :  { %s1948_s11 = smov 0   ;;  %s1950_s12 = smov 0  }
   0xa LB: > { %s1881_s13 = smov [#allocation5]   ;;  %s1965_s15 = sadd.s32 4294967295, %s1879_s12   ;;  %s1879_s12 = sphi %s1950_s12, %s2398_s12   ;;  %s1875_s11 = sphi %s1948_s11, %s2397_s11   ;;  %s1871_s10 = sphi %s1946_s10, %s2396_s10   ;;  %s1867_s30 = sphi %s1944_s30, %s2395_s30  }
   0xb   : > { %s264_s14 = sshll.u32 %s1881_s13, 4  ;;  %p1374_p0 = scmp.ge.s32.totalorder %s1879_s12, 1  ;;  %s1970_s14 = int_to_ptr.vmem [resolvable:$true] %s264_s14 }
   0xc   : > { %p2371_p1 = scmp.eq.s32.totalorder %s1965_s15, 0  ;;  %p252_p2 = scmp.lt.s32.totalorder %s1879_s12, 3 }
   0xd   : > { %s1882_s17 = smov [#allocation8]   ;;  %s1883_s20 = smov [#allocation7]  }
   0xe   : > { %p1972_p3 = pnand %p1374_p0, %p252_p2  ;;  %s290_s18 = sshll.u32 %s1882_s17, 4  ;;  %s1985_s18 = int_to_ptr.vmem [resolvable:$true] %s290_s18 }
   0xf   : > { %s277_s21 = sshll.u32 %s1883_s20, 4  ;;  %s2378_s1 = sld [smem:[#allocation16_spill]]  ;;  %s1987_s21 = int_to_ptr.vmem [resolvable:$true] %s277_s21 }
  0x10   : > { %s2376_s16 = scalar_select %p1972_p3, 1, 0 }
  0x11   : > { %p1567_p5 = pneg %p1972_p3 }
  0x13   : > { %p1981_p6 = pnand %p1567_p5, %p2371_p1 }
  0x15   : > { %s1663_s24 = scalar_lea.hbm %s2378_s1, 256  ;;  %p1997_p8 = pneg %p1981_p6 }
  0x16   : > { %p1664_p7 = scmp.ne.s32.totalorder %s2378_s1, %s1663_s24  ;;  %p1670_p11 = scmp.lt.u32.totalorder %s1663_s24, %s2378_s1 }
  0x18   : > { %p1666_p9 = pnand %p1997_p8, %p1664_p7 }
  0x1a   : > { %p1667_p10 = pneg %p1666_p9 }
  0x1c   : > { %p1672_p12 = pnand %p1670_p11, %p1667_p10 }
  0x1e   : > { %1675 = shalt.err (!%p1672_p12)
}
  0x1f   : > { %s1676_s13 = scalar_lea.vmem %s1970_s14, 256  ;;  %p1684_p5 = scmp.lt.s32.totalorder %s1970_s14, %s1970_s14 }
  0x20   : > { %p1677_p13 = scmp.ne.s32.totalorder %s1970_s14, %s1676_s13  ;;  %p1685_p4 = scmp.lt.s32.totalorder %s1676_s13, %s1676_s13 }
  0x22   : > { %p1679_p0 = pnand %p1677_p13, %p1997_p8  ;;  %p1686_p7 = por %p1685_p4, %p1684_p5 }
  0x24   : > { %p1680_p2 = pneg %p1679_p0 }
  0x26   : > { %p1687_p9 = pnand %p1686_p7, %p1680_p2 }
  0x28   : > { %1690 = shalt.err (!%p1687_p9)
}
  0x29   : > { %s1884_s17 = smov 64   ;;  %s1885_s20 = smov 4  }
  0x2a   : > { %1570 = dma.hbm_to_vmem [thread:$0]  (!%p1981_p6), %s2378_s1, 256, %s1970_s14, [#allocation6], %s1884_s17, %s1884_s17, %s1885_s20  }
  0x2b   : > { %s1691_s26 = scalar_lea.hbm %s2363_s3, 256 }
  0x2c   : > { %p1692_p4 = scmp.ne.s32.totalorder %s2363_s3, %s1691_s26  ;;  %p1698_p12 = scmp.lt.u32.totalorder %s1691_s26, %s2363_s3 }
  0x2e   : > { %p1694_p10 = pnand %p1692_p4, %p1997_p8 }
  0x30   : > { %p1695_p11 = pneg %p1694_p10 }
  0x32   : > { %p1700_p13 = pnand %p1698_p12, %p1695_p11 }
  0x34   : > { %1703 = shalt.err (!%p1700_p13)
}
  0x35   : > { %s1704_s14 = scalar_lea.vmem %s1985_s18, 256  ;;  %p1712_p7 = scmp.lt.s32.totalorder %s1985_s18, %s1985_s18 }
  0x36   : > { %p1705_p0 = scmp.ne.s32.totalorder %s1985_s18, %s1704_s14  ;;  %p1713_p9 = scmp.lt.s32.totalorder %s1704_s14, %s1704_s14 }
  0x38   : > { %p1707_p2 = pnand %p1705_p0, %p1997_p8  ;;  %p1714_p4 = por %p1713_p9, %p1712_p7 }
  0x3a   : > { %p1708_p5 = pneg %p1707_p2 }
  0x3c   : > { %p1715_p10 = pnand %p1714_p4, %p1708_p5 }
  0x3e   : > { %1718 = shalt.err (!%p1715_p10)
}
  0x3f   : > { %1576 = dma.hbm_to_vmem [thread:$0]  (!%p1981_p6), %s2363_s3, 256, %s1985_s18, [#allocation9], %s1884_s17, %s1884_s17, %s1885_s20  }
  0x40   : > { %s1719_s25 = scalar_lea.hbm %s2362_s2, 256 }
  0x41   : > { %p1720_p11 = scmp.ne.s32.totalorder %s2362_s2, %s1719_s25  ;;  %p1726_p0 = scmp.lt.u32.totalorder %s1719_s25, %s2362_s2 }
  0x43   : > { %p1722_p12 = pnand %p1720_p11, %p1997_p8 }
  0x45   : > { %p1723_p13 = pneg %p1722_p12 }
  0x47   : > { %p1728_p2 = pnand %p1726_p0, %p1723_p13 }
  0x49   : > { %1731 = shalt.err (!%p1728_p2)
}
  0x4a   : > { %s1732_s18 = scalar_lea.vmem %s1987_s21, 256  ;;  %p1740_p4 = scmp.lt.s32.totalorder %s1987_s21, %s1987_s21 }
  0x4b   : > { %p1733_p5 = scmp.ne.s32.totalorder %s1987_s21, %s1732_s18  ;;  %p1741_p10 = scmp.lt.s32.totalorder %s1732_s18, %s1732_s18 }
  0x4d   : > { %p1735_p7 = pnand %p1733_p5, %p1997_p8  ;;  %p1742_p11 = por %p1741_p10, %p1740_p4 }
  0x4f   : > { %p1736_p9 = pneg %p1735_p7 }
  0x51   : > { %p1743_p12 = pnand %p1742_p11, %p1736_p9 }
  0x53   : > { %1746 = shalt.err (!%p1743_p12)
}
  0x54   : > { %1573 = dma.hbm_to_vmem [thread:$0]  (!%p1981_p6), %s2362_s2, 256, %s1987_s21, [#allocation6], %s1884_s17, %s1884_s17, %s1885_s20  }
  0x55   : > { %s1886_s22 = smov [#allocation10]   ;;  %s1747_s26 = scalar_lea.hbm %s2364_s4, 256 }
  0x56   : > { %s303_s23 = sshll.u32 %s1886_s22, 4  ;;  %p1748_p13 = scmp.ne.s32.totalorder %s2364_s4, %s1747_s26  ;;  %s304_s23 = int_to_ptr.vmem [resolvable:$true] %s303_s23 }
  0x57   : > { %p1754_p5 = scmp.lt.u32.totalorder %s1747_s26, %s2364_s4 }
  0x58   : > { %p1750_p0 = pnand %p1748_p13, %p1997_p8 }
  0x5a   : > { %p1751_p2 = pneg %p1750_p0 }
  0x5c   : > { %p1756_p7 = pnand %p1754_p5, %p1751_p2 }
  0x5e   : > { %1759 = shalt.err (!%p1756_p7)
}
  0x5f   : > { %s1760_s21 = scalar_lea.vmem %s304_s23, 256  ;;  %p1768_p11 = scmp.lt.s32.totalorder %s304_s23, %s304_s23 }
  0x60   : > { %p1761_p9 = scmp.ne.s32.totalorder %s304_s23, %s1760_s21  ;;  %p1769_p12 = scmp.lt.s32.totalorder %s1760_s21, %s1760_s21 }
  0x62   : > { %p1763_p4 = pnand %p1761_p9, %p1997_p8  ;;  %p1770_p1 = por %p1769_p12, %p1768_p11 }
  0x64   : > { %p1764_p10 = pneg %p1763_p4 }
  0x66   : > { %p1771_p3 = pnand %p1770_p1, %p1764_p10 }
  0x68   : > { %1774 = shalt.err (!%p1771_p3)
}
  0x69   : > { %1579 = dma.hbm_to_vmem [thread:$0]  (!%p1981_p6), %s2364_s4, 256, %s304_s23, [#allocation9], %s1884_s17, %s1884_s17, %s1885_s20  }
  0x6a   : > { %s1373_s19 = sadd.s32 4294967294, %s1879_s12   ;;  %s2096_s27 = sadd.s32 1, %s1879_s12  }
  0x6b   : > { %s31_s22 = ssub.s32 %s1879_s12, %s2096_s27  ;;  %s34_s24 = sadd.s32 1, %s1875_s11 }
  0x6c   : > { %p32_p1 = scmp.eq.s32.totalorder %s31_s22, 0  ;;  %p41_p3 = scmp.ne.s32.totalorder %s1875_s11, %s1871_s10 }
  0x6d   : > { %p42_p8 = scmp.eq.s32.totalorder %s1879_s12, 0  ;;  %p47_p13 = scmp.ne.s32.totalorder %s1871_s10, %s1867_s30 }
  0x6e   : > { %s2107_s25 = scalar_select %p32_p1, %s1875_s11, %s34_s24  }
  0x6f   : > { %p2109_p0 = por %p42_p8, %p41_p3  ;;  %p2381_p2 = scmp.eq.s32.totalorder %s1965_s15, 0 }
  0x70   : > { %p239_p5 = scmp.eq.s32.totalorder %s1965_s15, 1  ;;  %p245_p7 = scmp.eq.s32.totalorder %s1373_s19, 1 }
  0x71   : > { %p2115_p6 = por %p2381_p2, %p47_p13  ;;  %p1592_p9 = scmp.lt.s32.totalorder %s1879_s12, 2 }
  0x72   : > { %s329_s20 = sand.u32 1, %s1875_s11   ;;  %p2122_p4 = por %p239_p5, %p41_p3 }
  0x73   : > { %p2126_p10 = por %p245_p7, %p47_p13  ;;  %s1380_s29 = sshll.u32 %s329_s20, 2 }
  0x74   : > { %s2383_s23 = scalar_select %p2122_p4, 1, 0 }
  0x75   : > { %s2384_s28 = scalar_select %p2126_p10, 1, 0 }
  0x76   : > { %s1381_s13 = sshll.u32 %s1879_s12, 6  ;;  %s333_s9 = scalar_lea.vmem [#allocation2], %s1380_s29 }
  0x77   : > { %s2134_s14 = scalar_lea.hbm %s2360_s0, %s1381_s13  ;;  %s340_s19 = sshll.u32 %s333_s9, 4  ;;  %s2136_s19 = int_to_ptr.vmem [resolvable:$true] %s340_s19 }
  0x78   : > { %p2140_p11 = pnand %p1592_p9, %p2109_p0  ;;  %s330_s24 = scalar_lea.sflag [#allocation3], %s329_s20 }
  0x79   : > { %s1775_s1 = scalar_lea.hbm %s2134_s14, 64  ;;  %s1780_s18 = scalar_lea.hbm %s2360_s0, 128 }
  0x7a   : > { %p1776_p12 = scmp.ne.s32.totalorder %s2134_s14, %s1775_s1  ;;  %p1777_p1 = pneg %p2140_p11 }
  0x7b   : > { %p1781_p13 = scmp.lt.u32.totalorder %s2134_s14, %s2360_s0  ;;  %p1782_p0 = scmp.lt.u32.totalorder %s1780_s18, %s1775_s1 }
  0x7c   : > { %p1778_p3 = pnand %p1777_p1, %p1776_p12  ;;  %p1784_p5 = scmp.lt.u32.totalorder %s1775_s1, %s2134_s14 }
  0x7d   : > { %p1783_p2 = por %p1782_p0, %p1781_p13 }
  0x7e   : > { %p1779_p8 = pneg %p1778_p3 }
  0x7f   : > { %p1785_p7 = por %p1784_p5, %p1783_p2 }
  0x81   : > { %p1786_p9 = pnand %p1785_p7, %p1779_p8 }
  0x83   : > { %1789 = shalt.err (!%p1786_p9)
}
  0x84   : > { %s1790_s20 = scalar_lea.vmem %s2136_s19, 64  ;;  %s1887_s9 = smov [#allocation2]  }
  0x85   : > { %p1791_p12 = scmp.ne.s32.totalorder %s2136_s19, %s1790_s20  ;;  %s1795_s29 = sshll.u32 %s1887_s9, 4  ;;  %s1796_s29 = int_to_ptr.vmem [resolvable:$false] %s1795_s29 }
  0x86   : > { %s1797_s13 = scalar_lea.vmem %s1796_s29, 128  ;;  %p1798_p4 = scmp.lt.s32.totalorder %s2136_s19, %s1796_s29 }
  0x87   : > { %p1793_p3 = pnand %p1791_p12, %p1777_p1  ;;  %p1799_p13 = scmp.lt.s32.totalorder %s1797_s13, %s1790_s20 }
  0x89   : > { %p1794_p10 = pneg %p1793_p3  ;;  %p1800_p0 = por %p1799_p13, %p1798_p4 }
  0x8b   : > { %p1801_p2 = pnand %p1800_p0, %p1794_p10 }
  0x8d   : > { %1804 = shalt.err (!%p1801_p2)
}
  0x8e   : > { %1583 = dma.hbm_to_vmem [thread:$0]  (!%p2140_p11), %s2134_s14, 64, %s2136_s19, %s330_s24  }
  0x8f   : > { %p2386_p8 = scmp.ne.s32.totalorder %s2376_s16, 0 }
  0x90   : > { %s2172_s1 = sand.u32 (!%p2386_p8), 1, %s1871_s10  }
  0x91   : > { %349 = sbr.rel (%p2386_p8) target bundleno = 2982 (0xba6), region = 56  ;;  %s1383_s18 = sshll.u32 (!%p2386_p8), %s2172_s1, 2 }
  0x92   : > { %s352_s26 = scalar_lea.sflag (!%p2386_p8), [#allocation3], %s2172_s1  ;;  %s355_s21 = scalar_lea.vmem (!%p2386_p8), [#allocation2], %s1383_s18 }
  0x98   : > { %1850 = dma.done.wait (%p2115_p6), %s352_s26, 64  }
  0x99   : > { %1852 = vsyncadd (%p2115_p6), %s352_s26, 4294967232  ;;  %p2387_p4 = scmp.eq.s32.totalorder %s1965_s15, 0 }
  0x9b   : > { %1854 = dma.done.wait (%p2387_p4), [#allocation6], 512   ;;  %p2388_p10 = pmov %p2387_p4 }
  0x9c   : > { %p2389_p11 = pmov %p2387_p4 }
  0x9d   : > { %1856 = vsyncadd (%p2388_p10), [#allocation6], 4294966784 }
  0x9e   : > { %1858 = dma.done.wait (%p2389_p11), [#allocation9], 512   ;;  %p2390_p1 = pmov %p2387_p4 }
  0x9f   : > { %v1888_v0 = vmov 0.0   ;;  %vm1889_vm0 = vmmov 0   ;;  %v1641_v1 = vld [vmem:[#allocation5] sm:$0xff]   ;;  %v1642_v2 = vld [vmem:[#allocation5 + $0x8] sm:$0xff]   ;;  %v1643_v3 = vld [vmem:[#allocation7] sm:$0xff]   ;;  %vm431_vm1 = vcmask 261120  }
  0xa0   : > { %1860 = vsyncadd (%p2390_p1), [#allocation9], 4294966784  ;;  %1451 = vmatprep.subr.bf16.mxu0 %v1888_v0  ;;  %1455 = vmatprep.mubr.msk.bf16.mxu0 %vm1889_vm0, %v1888_v0  ;;  %v407_v4 = vld [vmem:[%s355_s21] sm:$0xf]  ;;  %v1644_v5 = vld [vmem:[#allocation8] sm:$0xff]   ;;  %vm609_vm2 = vcmask 64512  }
  0xa1   : > { %1459 = vmatprep.subr.bf16.mxu1 %v1888_v0  ;;  %1463 = vmatprep.mubr.msk.bf16.mxu1 %vm1889_vm0, %v1888_v0  ;;  %v1645_v6 = vld [vmem:[#allocation7 + $0x8] sm:$0xff]   ;;  %v1646_v7 = vld [vmem:[#allocation8 + $0x8] sm:$0xff]   ;;  %vm671_vm3 = vcmask 1043456   ;;  %s1890_s20 = smov 120   ;;  %s1891_s9 = smov 112  }
  0xa2   : > { %1452 = vmatpush3.bf16.msra.mxu0 %v1641_v1  ;;  %1460 = vmatpush3.bf16.msra.mxu1 %v1643_v3  ;;  %v1389_v8 = vld [vmem:[%s2365_s5] ss:$0 sm:$0xff]  ;;  %v830_v60 = vld [vmem:[#allocation10 + $0x4] sm:$0xf]  ;;  %v715_v3 = vld [vmem:[#allocation10] sm:$0xf] }
  0xa3   : > { %1453 = vmatprep.subr.bf16.mxu0 %v1888_v0  ;;  %1461 = vmatprep.subr.bf16.mxu1 %v1888_v0  ;;  %v1393_v15 = vld [vmem:[%s2366_s6] ss:$0 sm:$0xff]  ;;  %v836_v61 = vsel %vm671_vm3, %v830_v60, 0  ;;  %s1892_s29 = smov 104   ;;  %s1388_s13 = sshll.u32 %s2172_s1, 3 }
  0xa4   : > { %v1397_v16 = vld [vmem:[%s2367_s7] ss:$0 sm:$0xff]  ;;  %s1415_s21 = sshll.u32 %s1965_s15, 7  ;;  %s405_s16 = scalar_lea.vmem [#allocation11], %s1388_s13 }
  0xa5   : > { %s1265_s17 = sshll.u32 %s405_s16, 4  ;;  %s2391_s22 = sld [smem:[#allocation17_spill]]  ;;  %s2317_s17 = int_to_ptr.vmem [resolvable:$true] %s1265_s17 }
  0xa6   : > { %1454 = vmatpush3.bf16.msra.mxu0 %v1642_v2  ;;  %1462 = vmatpush3.bf16.msra.mxu1 %v1645_v6  ;;  %v882_v6 = vsel %vm671_vm3, %v715_v3, 0  ;;  %v1193_v3 = vld [vmem:[#allocation10 + $0xc] sm:$0xf]  ;;  %s1252_s15 = scalar_lea.sflag [#allocation4], %s2172_s1  ;;  %p2392_p5 = scmp.ne.s32.totalorder %s2383_s23, 0 }
  0xa7   : > { %1467 = vmatprep.subr.bf16.mxu0 %v1888_v0  ;;  %1475 = vmatprep.subr.bf16.mxu1 %v1888_v0 }
  0xa9   : > { %1456 = vmatmul.mubr.msk.bf16.vlgmr.msra.gmra.mrb[0].mxu0 %vm431_vm1, %v407_v4 }
  0xaa   : > { %1468 = vmatpush3.bf16.msra.mxu0 %v1644_v5  ;;  %1471 = vmatprep.mubr.msk.bf16.mxu0 %vm1889_vm0, %v1888_v0 }
  0xab   : > { %1469 = vmatprep.subr.bf16.mxu0 %v1888_v0  ;;  %s2315_s24 = scalar_lea.hbm %s2391_s22, %s1415_s21 }
  0xae   : > { %1470 = vmatpush3.bf16.msra.mxu0 %v1646_v7 }
  0xaf   : > { %1481 = vmatprep.subr.bf16.mxu0 %v1888_v0 }
 0x17c   : > { %v469_v9 = vpop.f32.mrb[0].mxu0 }
 0x17d   : > { %v470_v10 = vadd.f32 %v1389_v8, %v469_v9  ;;  %v1457_v11 = vpop.f32.mrb[1].mxu0 }
 0x17e   : > { %v472_v12 = vpop.f32.mrb[2].mxu0 }
 0x17f   : > { %v475_v13 = vpack.c.bf16 %v470_v10, %v470_v10  ;;  %v1458_v14 = vpop.f32.mrb[3].mxu0  ;;  %v605_v25 = vmul.f32 0.35355338, %v470_v10 }
 0x181   : > { %1464 = vmatmul.mubr.msk.bf16.vlgmr.msra.gmra.mrb[0].mxu1 %vm431_vm1, %v475_v13  ;;  %1472 = vmatmul.mubr.msk.bf16.vlgmr.msra.gmra.mrb[4].mxu0 %vm431_vm1, %v475_v13  ;;  %v2228_v32 = vpack.c.bf16 %v605_v25, %v605_v25 }
 0x182   : > { %1477 = vmatprep.mubr.msk.bf16.mxu1 %vm1889_vm0, %v1888_v0  ;;  %1483 = vmatprep.mubr.msk.bf16.mxu0 %vm1889_vm0, %v1888_v0 }
 0x254   : > { %v536_v17 = vpop.f32.mrb[0].mxu1  ;;  %v599_v18 = vpop.f32.mrb[4].mxu0 }
 0x255   : > { %v537_v19 = vadd.f32 %v1393_v15, %v536_v17  ;;  %v600_v20 = vadd.f32 %v1397_v16, %v599_v18  ;;  %v1465_v21 = vpop.f32.mrb[1].mxu1  ;;  %v1473_v22 = vpop.f32.mrb[5].mxu0 }
 0x256   : > { %v539_v23 = vpop.f32.mrb[2].mxu1  ;;  %v602_v24 = vpop.f32.mrb[6].mxu0 }
 0x257   : > { %v2218_v26 = vpack.c.bf16 %v537_v19, %v537_v19  ;;  %v2220_v27 = vpack.c.bf16 %v600_v20, %v600_v20  ;;  %v1466_v28 = vpop.f32.mrb[3].mxu1  ;;  %v1474_v29 = vpop.f32.mrb[7].mxu0 }
 0x259   : > { %721 = vrot.lane.b32.xlu0 %v2218_v26, %s1890_s20  ;;  %v614_v30 = vsel %vm609_vm2, %v2218_v26, 0  ;;  %v673_v31 = vsel %vm671_vm3, %v2220_v27, 0 }
 0x25a   : > { %1476 = vmatpush3.bf16.xpose.msra.mxu1 %v614_v30  ;;  %1482 = vmatpush3.bf16.msra.mxu0 %v673_v31 }
 0x25b   : > { %1487 = vmatprep.subr.bf16.mxu1 %v1888_v0  ;;  %1493 = vmatprep.subr.bf16.mxu0 %v1888_v0 }
 0x25d   : > { %718 = vrot.lane.b32.xlu0 %v2228_v32, %s1890_s20 }
 0x261   : > { %1478 = vmatmul.mubr.msk.bf16.vlgmr.msra.gmra.mrb[4].mxu1 %vm609_vm2, %v2228_v32 }
 0x262   : > { %1489 = vmatprep.mubr.msk.bf16.mxu1 %vm1889_vm0, %v1888_v0 }
 0x2cb   : > { %v722_v33 = vpop.permute.xlu0 %721 }
 0x2cc   : > { %v727_v34 = vsel %vm609_vm2, %v722_v33, 0 }
 0x2cd   : > { %1488 = vmatpush3.bf16.xpose.msra.mxu1 %v727_v34 }
 0x2ce   : > { %1499 = vmatprep.subr.bf16.mxu1 %v1888_v0 }
 0x2cf   : > { %v719_v35 = vpop.permute.xlu0 %718 }
 0x2d4   : > { %1490 = vmatmul.mubr.msk.bf16.vlgmr.msra.gmra.mrb[8].mxu1 %vm609_vm2, %v719_v35 }
 0x2d5   : > { %1501 = vmatprep.mubr.msk.bf16.mxu1 %vm1889_vm0, %v1888_v0  ;;  %1500 = vmatpush3.bf16.msra.mxu1 %v836_v61 }
 0x2d6   : > { %1511 = vmatprep.subr.bf16.mxu1 %v1888_v0 }
 0x334   : > { %v650_v36 = vpop.f32.mrb[4].mxu1 }
 0x335   : > { %v1479_v37 = vpop.f32.mrb[5].mxu1  ;;  %v656_v38 = vsel %vm609_vm2, %v650_v36, -inf }
 0x336   : > { %657 = vmax.xlane.f32.xlu1 %v656_v38  ;;  %v653_v39 = vpop.f32.mrb[6].mxu1 }
 0x337   : > { %v1480_v40 = vpop.f32.mrb[7].mxu1 }
 0x3a7   : > { %v763_v41 = vpop.f32.mrb[8].mxu1 }
 0x3a8   : > { %v1491_v42 = vpop.f32.mrb[9].mxu1  ;;  %v769_v43 = vsel %vm609_vm2, %v763_v41, -inf }
 0x3a9   : > { %770 = vmax.xlane.f32.xlu1 %v769_v43  ;;  %v766_v44 = vpop.f32.mrb[10].mxu1 }
 0x3aa   : > { %v1492_v45 = vpop.f32.mrb[11].mxu1 }
 0x3c3   : > { %v658_v46 = vpop.xlane.xlu1 %657 }
 0x3c4   : > { %v659_v47 = vsub.f32 %v650_v36, %v658_v46 }
 0x3c6   : > { %v660_v48 = vmul.f32 1.442695, %v659_v47 }
 0x3c8   : > { %1647 = vpow2.f32 %v660_v48 }
 0x3d2   : > { %v1648_v49 = vpop.eup %1647 }
 0x3d3   : > { %v662_v50 = vsel %vm609_vm2, %v1648_v49, 0.0 }
 0x3d4   : > { %663 = vadd.xlane.f32.xlu0 %v662_v50 }
 0x3ea   : > { %986 = vrot.lane.b32.xlu0 %v2220_v27, %s1891_s9 }
 0x436   : > { %v771_v51 = vpop.xlane.xlu1 %770 }
 0x437   : > { %v772_v52 = vsub.f32 %v763_v41, %v771_v51 }
 0x439   : > { %v773_v53 = vmul.f32 1.442695, %v772_v52 }
 0x43b   : > { %1649 = vpow2.f32 %v773_v53 }
 0x445   : > { %v1650_v54 = vpop.eup %1649 }
 0x446   : > { %v775_v55 = vsel %vm609_vm2, %v1650_v54, 0.0 }
 0x447   : > { %776 = vadd.xlane.f32.xlu1 %v775_v55 }
 0x458   : > { %782 = vrot.lane.b32.xlu1 %v2220_v27, %s1890_s20  ;;  %s1805_s20 = scalar_lea.vmem %s2317_s17, 128 }
 0x459   : > { %p1806_p6 = scmp.ne.s32.totalorder %s2317_s17, %s1805_s20 }
 0x45b   : > { %p1807_p7 = pnand %p1806_p6, %p2392_p5 }
 0x45c   : > { %926 = vrot.lane.b32.xlu1 %v2218_v26, %s1891_s9 }
 0x45d   : > { %p1808_p9 = pneg %p1807_p7 }
 0x460   : > { %924 = vrot.lane.b32.xlu1 %v2228_v32, %s1891_s9  ;;  %s1893_s9 = smov [#allocation11]  }
 0x461   : > { %v664_v56 = vpop.xlane.xlu0 %663 }
 0x462   : > { %1651 = vrcp.f32 %v664_v56 }
 0x465   : > { %v987_v7 = vpop.permute.xlu0 %986 }
 0x466   : > { %v992_v12 = vsel %vm671_vm3, %v987_v7, 0 }
 0x46c   : > { %v1652_v57 = vpop.eup %1651 }
 0x46d   : > { %v666_v58 = vmul.f32 %v1652_v57, %v1648_v49 }
 0x46f   : > { %v667_v59 = vpack.c.bf16 %v666_v58, %v666_v58 }
 0x471   : > { %1484 = vmatmul.mubr.msk.bf16.vlgmr.msra.gmra.mrb[8].mxu0 %vm609_vm2, %v667_v59 }
 0x472   : > { %1495 = vmatprep.mubr.msk.bf16.mxu0 %vm1889_vm0, %v1888_v0 }
 0x4d4   : > { %v777_v62 = vpop.xlane.xlu1 %776 }
 0x4d5   : > { %1653 = vrcp.f32 %v777_v62 }
 0x4d8   : > { %v783_v63 = vpop.permute.xlu1 %782 }
 0x4d9   : > { %v788_v1 = vsel %vm671_vm3, %v783_v63, 0 }
 0x4da   : > { %1494 = vmatpush3.bf16.msra.mxu0 %v788_v1 }
 0x4db   : > { %1505 = vmatprep.subr.bf16.mxu0 %v1888_v0 }
 0x4dc   : > { %v927_v14 = vpop.permute.xlu1 %926 }
 0x4dd   : > { %v932_v19 = vsel %vm609_vm2, %v927_v14, 0 }
 0x4df   : > { %v1654_v2 = vpop.eup %1653 }
 0x4e0   : > { %v779_v4 = vmul.f32 %v1654_v2, %v1650_v54  ;;  %v925_v21 = vpop.permute.xlu1 %924 }
 0x4e2   : > { %v780_v5 = vpack.c.bf16 %v779_v4, %v779_v4 }
 0x4e4   : > { %1496 = vmatmul.mubr.msk.bf16.vlgmr.msra.gmra.mrb[12].mxu0 %vm609_vm2, %v780_v5 }
 0x4e5   : > { %1506 = vmatpush3.bf16.msra.mxu0 %v882_v6  ;;  %1507 = vmatprep.mubr.msk.bf16.mxu0 %vm1889_vm0, %v1888_v0 }
 0x4e6   : > { %1517 = vmatprep.subr.bf16.mxu0 %v1888_v0 }
 0x544   : > { %v709_v8 = vpop.f32.mrb[8].mxu0 }
 0x545   : > { %v716_v9 = vpack.c.bf16 %v709_v8, %v709_v8  ;;  %v1485_v10 = vpop.f32.mrb[9].mxu0 }
 0x546   : > { %v712_v11 = vpop.f32.mrb[10].mxu0 }
 0x547   : > { %v1486_v13 = vpop.f32.mrb[11].mxu0  ;;  %1508 = vmatmul.mubr.msk.bf16.vlgmr.msra.gmra.mrb[16].mxu0 %vm609_vm2, %v716_v9 }
 0x548   : > { %1518 = vmatpush3.bf16.msra.mxu0 %v992_v12  ;;  %1519 = vmatprep.mubr.msk.bf16.mxu0 %vm1889_vm0, %v1888_v0 }
 0x549   : > { %1529 = vmatprep.subr.bf16.mxu0 %v1888_v0 }
 0x5b7   : > { %v824_v15 = vpop.f32.mrb[12].mxu0 }
 0x5b8   : > { %v831_v16 = vpack.c.bf16 %v824_v15, %v824_v15  ;;  %v1497_v17 = vpop.f32.mrb[13].mxu0 }
 0x5b9   : > { %v827_v18 = vpop.f32.mrb[14].mxu0 }
 0x5ba   : > { %v1498_v20 = vpop.f32.mrb[15].mxu0  ;;  %1502 = vmatmul.mubr.msk.bf16.vlgmr.msra.gmra.mrb[12].mxu1 %vm609_vm2, %v831_v16 }
 0x5bb   : > { %1512 = vmatpush3.bf16.xpose.msra.mxu1 %v932_v19  ;;  %1513 = vmatprep.mubr.msk.bf16.mxu1 %vm1889_vm0, %v1888_v0  ;;  %v1413_v20 = vld [vmem:[%s2368_s8] ss:$0 sm:$0xff] }
 0x5bc   : > { %1523 = vmatprep.subr.bf16.mxu1 %v1888_v0 }
 0x5c2   : > { %1514 = vmatmul.mubr.msk.bf16.vlgmr.msra.gmra.mrb[16].mxu1 %vm609_vm2, %v925_v21 }
 0x5c3   : > { %1525 = vmatprep.mubr.msk.bf16.mxu1 %vm1889_vm0, %v1888_v0 }
 0x61a   : > { %v918_v22 = vpop.f32.mrb[16].mxu0 }
 0x61b   : > { %v1509_v23 = vpop.f32.mrb[17].mxu0 }
 0x61c   : > { %v921_v24 = vpop.f32.mrb[18].mxu0 }
 0x61d   : > { %v1510_v25 = vpop.f32.mrb[19].mxu0 }
 0x68d   : > { %v872_v28 = vpop.f32.mrb[12].mxu1 }
 0x68e   : > { %v2277_v29 = vadd.f32 %v918_v22, %v872_v28  ;;  %v1503_v30 = vpop.f32.mrb[13].mxu1 }
 0x68f   : > { %v875_v31 = vpop.f32.mrb[14].mxu1 }
 0x690   : > { %v1504_v33 = vpop.f32.mrb[15].mxu1 }
 0x695   : > { %v968_v34 = vpop.f32.mrb[16].mxu1 }
 0x696   : > { %v1515_v35 = vpop.f32.mrb[17].mxu1  ;;  %v974_v36 = vsel %vm609_vm2, %v968_v34, -inf }
 0x697   : > { %975 = vmax.xlane.f32.xlu1 %v974_v36  ;;  %v971_v37 = vpop.f32.mrb[18].mxu1 }
 0x698   : > { %v1516_v38 = vpop.f32.mrb[19].mxu1 }
 0x724   : > { %v976_v39 = vpop.xlane.xlu1 %975 }
 0x725   : > { %v977_v40 = vsub.f32 %v968_v34, %v976_v39 }
 0x727   : > { %v978_v41 = vmul.f32 1.442695, %v977_v40 }
 0x729   : > { %1655 = vpow2.f32 %v978_v41 }
 0x733   : > { %v1656_v42 = vpop.eup %1655 }
 0x734   : > { %v980_v43 = vsel %vm609_vm2, %v1656_v42, 0.0 }
 0x735   : > { %981 = vadd.xlane.f32.xlu0 %v980_v43 }
 0x74b   : > { %1085 = vrot.lane.b32.xlu0 %v2218_v26, %s1892_s29 }
 0x74f   : > { %1083 = vrot.lane.b32.xlu0 %v2228_v32, %s1892_s29  ;;  %v1034_v32 = vld [vmem:[#allocation10 + $0x8] sm:$0xf] }
 0x750   : > { %v1040_v50 = vsel %vm671_vm3, %v1034_v32, 0 }
 0x751   : > { %1524 = vmatpush3.bf16.msra.mxu1 %v1040_v50 }
 0x752   : > { %1535 = vmatprep.subr.bf16.mxu1 %v1888_v0 }
 0x7c2   : > { %v982_v44 = vpop.xlane.xlu0 %981 }
 0x7c3   : > { %1657 = vrcp.f32 %v982_v44 }
 0x7c6   : > { %v1086_v47 = vpop.permute.xlu0 %1085 }
 0x7c7   : > { %v1091_v49 = vsel %vm609_vm2, %v1086_v47, 0 }
 0x7ca   : > { %v1084_v26 = vpop.permute.xlu0 %1083 }
 0x7cd   : > { %v1658_v45 = vpop.eup %1657 }
 0x7ce   : > { %v984_v46 = vmul.f32 %v1658_v45, %v1656_v42 }
 0x7d0   : > { %v985_v48 = vpack.c.bf16 %v984_v46, %v984_v46 }
 0x7d2   : > { %1520 = vmatmul.mubr.msk.bf16.vlgmr.msra.gmra.mrb[20].mxu0 %vm609_vm2, %v985_v48 }
 0x7d3   : > { %1530 = vmatpush3.bf16.xpose.msra.mxu0 %v1091_v49  ;;  %1531 = vmatprep.mubr.msk.bf16.mxu0 %vm1889_vm0, %v1888_v0 }
 0x7d4   : > { %1541 = vmatprep.subr.bf16.mxu0 %v1888_v0 }
 0x7da   : > { %1532 = vmatmul.mubr.msk.bf16.vlgmr.msra.gmra.mrb[24].mxu0 %vm609_vm2, %v1084_v26 }
 0x7db   : > { %1543 = vmatprep.mubr.msk.bf16.mxu0 %vm1889_vm0, %v1888_v0 }
 0x8a5   : > { %v1028_v51 = vpop.f32.mrb[20].mxu0 }
 0x8a6   : > { %v1035_v52 = vpack.c.bf16 %v1028_v51, %v1028_v51  ;;  %v1521_v53 = vpop.f32.mrb[21].mxu0 }
 0x8a7   : > { %v1031_v54 = vpop.f32.mrb[22].mxu0 }
 0x8a8   : > { %v1522_v55 = vpop.f32.mrb[23].mxu0  ;;  %1526 = vmatmul.mubr.msk.bf16.vlgmr.msra.gmra.mrb[20].mxu1 %vm609_vm2, %v1035_v52 }
 0x8a9   : > { %1537 = vmatprep.mubr.msk.bf16.mxu1 %vm1889_vm0, %v1888_v0  ;;  %v1199_v0 = vsel %vm671_vm3, %v1193_v3, 0 }
 0x8aa   : > { %1542 = vmatpush3.bf16.msra.mxu0 %v1199_v0 }
 0x8ad   : > { %v1127_v56 = vpop.f32.mrb[24].mxu0 }
 0x8ae   : > { %v1533_v57 = vpop.f32.mrb[25].mxu0  ;;  %v1133_v58 = vsel %vm609_vm2, %v1127_v56, -inf }
 0x8af   : > { %1134 = vmax.xlane.f32.xlu0 %v1133_v58  ;;  %v1130_v59 = vpop.f32.mrb[26].mxu0 }
 0x8b0   : > { %v1534_v60 = vpop.f32.mrb[27].mxu0 }
 0x93c   : > { %v1135_v61 = vpop.xlane.xlu0 %1134 }
 0x93d   : > { %v1136_v62 = vsub.f32 %v1127_v56, %v1135_v61 }
 0x93f   : > { %v1137_v63 = vmul.f32 1.442695, %v1136_v62 }
 0x941   : > { %1659 = vpow2.f32 %v1137_v63 }
 0x94b   : > { %v1660_v1 = vpop.eup %1659 }
 0x94c   : > { %v1139_v2 = vsel %vm609_vm2, %v1660_v1, 0.0 }
 0x94d   : > { %1140 = vadd.xlane.f32.xlu1 %v1139_v2 }
 0x95e   : > { %1145 = vrot.lane.b32.xlu1 %v2220_v27, %s1892_s29  ;;  %s1809_s29 = sshll.u32 %s1893_s9, 4  ;;  %s1810_s29 = int_to_ptr.vmem [resolvable:$false] %s1809_s29 }
 0x95f   : > { %s1811_s13 = scalar_lea.vmem %s1810_s29, 256  ;;  %p1812_p12 = scmp.lt.s32.totalorder %s2317_s17, %s1810_s29 }
 0x960   : > { %p1813_p3 = scmp.lt.s32.totalorder %s1811_s13, %s1805_s20 }
 0x962   : > { %p1814_p13 = por %p1813_p3, %p1812_p12 }
 0x964   : > { %p1815_p0 = pnand %p1814_p13, %p1808_p9 }
 0x97b   : > { %v1076_v4 = vpop.f32.mrb[20].mxu1 }
 0x97c   : > { %v1082_v5 = vadd.f32 %v1076_v4, %v2277_v29  ;;  %v1527_v6 = vpop.f32.mrb[21].mxu1 }
 0x97d   : > { %v1079_v7 = vpop.f32.mrb[22].mxu1 }
 0x97e   : > { %v1528_v8 = vpop.f32.mrb[23].mxu1 }
 0x9da   : > { %v1141_v9 = vpop.xlane.xlu1 %1140 }
 0x9db   : > { %1661 = vrcp.f32 %v1141_v9 }
 0x9de   : > { %v1146_v10 = vpop.permute.xlu1 %1145 }
 0x9df   : > { %v1151_v11 = vsel %vm671_vm3, %v1146_v10, 0 }
 0x9e0   : > { %1536 = vmatpush3.bf16.msra.mxu1 %v1151_v11 }
 0x9e5   : > { %v1662_v12 = vpop.eup %1661 }
 0x9e6   : > { %v1143_v27 = vmul.f32 %v1662_v12, %v1660_v1 }
 0x9e8   : > { %v1144_v13 = vpack.c.bf16 %v1143_v27, %v1143_v27 }
 0x9ea   : > { %1538 = vmatmul.mubr.msk.bf16.vlgmr.msra.gmra.mrb[24].mxu1 %vm609_vm2, %v1144_v13 }
 0xabd   : > { %v1187_v14 = vpop.f32.mrb[24].mxu1 }
 0xabe   : > { %v1194_v15 = vpack.c.bf16 %v1187_v14, %v1187_v14  ;;  %v1539_v16 = vpop.f32.mrb[25].mxu1 }
 0xabf   : > { %v1190_v17 = vpop.f32.mrb[26].mxu1 }
 0xac0   : > { %v1540_v18 = vpop.f32.mrb[27].mxu1  ;;  %1544 = vmatmul.mubr.msk.bf16.vlgmr.msra.gmra.mrb[28].mxu0 %vm609_vm2, %v1194_v15 }
 0xb93   : > { %v1235_v19 = vpop.f32.mrb[28].mxu0 }
 0xb94   : > { %v1241_v21 = vadd.f32 %v1235_v19, %v1082_v5  ;;  %v1545_v22 = vpop.f32.mrb[29].mxu0 }
 0xb95   : > { %v1238_v23 = vpop.f32.mrb[30].mxu0 }
 0xb96   : > { %v1249_v24 = vadd.f32 %v1413_v20, %v1241_v21  ;;  %v1546_v25 = vpop.f32.mrb[31].mxu0 }
 0xb98   : > { %1250 = vst.msk [vmem:[%s405_s16] sm:$0xff] %vm431_vm1, %v1249_v24 }
 0xb99   : > { %1818 = shalt.err (!%p1815_p0)
}
 0xb9a   : > { %s1819_s1 = scalar_lea.hbm %s2315_s24, 128  ;;  %s1823_s21 = scalar_lea.hbm %s2391_s22, 256 }
 0xb9b   : > { %p1820_p2 = scmp.ne.s32.totalorder %s2315_s24, %s1819_s1  ;;  %p1824_p10 = scmp.lt.u32.totalorder %s2315_s24, %s2391_s22 }
 0xb9c   : > { %p1825_p11 = scmp.lt.u32.totalorder %s1823_s21, %s1819_s1  ;;  %p1827_p6 = scmp.lt.u32.totalorder %s1819_s1, %s2315_s24 }
 0xb9d   : > { %p1821_p8 = pnand %p1820_p2, %p2392_p5 }
 0xb9e   : > { %p1826_p1 = por %p1825_p11, %p1824_p10 }
 0xb9f   : > { %p1822_p4 = pneg %p1821_p8 }
 0xba0   : > { %p1828_p7 = por %p1827_p6, %p1826_p1 }
 0xba2   : > { %p1829_p9 = pnand %p1828_p7, %p1822_p4 }
 0xba4   : > { %1832 = shalt.err (!%p1829_p9)
}
 0xba5   : > { %1565 = dma.vmem_to_hbm [thread:$0]  (%p2392_p5), %s2317_s17, 128, %s2315_s24, %s1252_s15  }
 0xba6 PF: > { %s1277_s19 = sand.u32 1, %s1867_s30   ;;  %p2393_p12 = scmp.ne.s32.totalorder %s2384_s28, 0 }
 0xba7   : > { %p2394_p3 = scmp.ge.s32.totalorder %s1879_s12, 2  ;;  %s1278_s20 = scalar_lea.sflag [#allocation4], %s1277_s19 }
 0xba9   : > { %p1585_p13 = pnand %p2394_p3, %p2393_p12 }
 0xbab   : > { %1862 = dma.done.wait (!%p1585_p13), %s1278_s20, 128  }
 0xbac   : > { %1864 = vsyncadd (!%p1585_p13), %s1278_s20, 4294967168  ;;  %p24_p0 = scmp.ge.s32.totalorder %s2096_s27, 4   ;;  %s2395_s30 = smov %s1871_s10 }
 0xbad   : > { %s2396_s10 = smov %s1875_s11  ;;  %s2397_s11 = smov %s2107_s25 }
 0xbae   : > { %s2398_s12 = smov %s2096_s27  ;;  %26 = sbr.rel (!%p24_p0) target bundleno = 10 (0xa), region = 117 }
 0xbb5   :  { %1283 = vsyncpa [#allocation3], 1 }
 0xbb6   :  { %1285 = vsyncpa [#allocation3 + $0x1], 1 }
 0xbb7   :  { %1286 = vsyncpa [#allocation6], 1 }
 0xbb8   :  { %1287 = vsyncpa [#allocation9], 1 }
 0xbb9   :  { %1288 = vsyncpa [#allocation4], 1 }
 0xbba   :  { %1290 = vsyncpa [#allocation4 + $0x1], 1 }

</bundles_post_ra>
